<compile_context>
chip_gen: v5e
topology: v5e:2x2
jax: 0.10.0
libtpu: 0.0.40
codegen_flags: <defaults>
</compile_context>

<pallas_src>
import jax
import jax.numpy as jnp
from jax.experimental import pallas as pl
from jax.experimental.pallas import tpu as pltpu


def _round_up(x, m):
    return ((x + m - 1) // m) * m


def _qmodel_kernel(x_ref, w1_ref, w12_ref, w22_ref, p_ref, out_ref):
    H = w12_ref.shape[0]  # hidden width (256)
    p = p_ref[...]        # f32 [8, 2H] packed small-parameter slab

    # --- layer 1: single fused MXU pass for both branches ---
    h = jnp.dot(x_ref[...], w1_ref[...], preferred_element_type=jnp.float32)
    # bias + ReLU in f32, then cast the big intermediate to bf16 exactly once.
    h = jnp.maximum(h + p[0:1, :], 0.0).astype(jnp.bfloat16)   # [tile_b, 2H]

    h1 = h[:, :H]          # Q1 branch activations (bf16)
    h2 = h[:, H:]          # Q2 branch activations (bf16)

    # --- layer 2: two separate HxH MXU calls (H fills the MXU), f32 acc ---
    a1 = jnp.dot(h1, w12_ref[...], preferred_element_type=jnp.float32)
    a1 = jnp.maximum(a1 + p[1:2, :H], 0.0)
    a2 = jnp.dot(h2, w22_ref[...], preferred_element_type=jnp.float32)
    a2 = jnp.maximum(a2 + p[1:2, H:], 0.0)

    # --- heads: N=1 matmul replaced by VPU multiply + lane (XLU) reduce, f32 ---
    q1 = jnp.sum(a1 * p[2:3, :H], axis=-1, keepdims=True)      # [tile_b, 1]
    q2 = jnp.sum(a2 * p[2:3, H:], axis=-1, keepdims=True)      # [tile_b, 1]

    # single lane-dense store of [tile_b, 2] (head biases broadcast-added)
    out_ref[...] = jnp.concatenate([q1, q2], axis=-1) + p[3:4, 0:2]


def qmodel_forward(state, action, packed, *, max_tile_b=1024):
    """Twin-Q forward. Returns (q1, q2), each [B, 1] float32."""
    B, S = state.shape
    A = action.shape[1]
    D = S + A
    H = packed["w12"].shape[0]

    # Balanced batch tiling: pick the number of grid steps first, then the tile,
    # so padding is at most 7 rows per step.  For large batches force >=2 steps
    # so the "parallel" axis can be sharded across v7x's two TensorCores.
    steps = pl.cdiv(B, max_tile_b)
    if B >= 256:
        steps = max(steps, 2)
    tile_b = _round_up(pl.cdiv(B, steps), 8)
    B_pad = _round_up(B, tile_b)
    grid = (B_pad // tile_b,)

    # Concat state/action here (fused into the bf16 cast/pad by XLA) so the
    # kernel does a single layer-1 matmul.
    x = jnp.concatenate([state, action], axis=1).astype(jnp.bfloat16)
    if B_pad != B:
        x = jnp.pad(x, ((0, B_pad - B), (0, 0)))

    def _row_map(i):
        return (i, 0)

    def _whole(i):
        return (0, 0)

    in_specs = [
        pl.BlockSpec((tile_b, D), _row_map),      # [state|action] tile (bf16)
        pl.BlockSpec((D, 2 * H), _whole),         # fused layer-1 weights (bf16)
        pl.BlockSpec((H, H), _whole),             # w12 (bf16)
        pl.BlockSpec((H, H), _whole),             # w22 (bf16)
        pl.BlockSpec((8, 2 * H), _whole),         # packed f32 small-param slab
    ]
    out_specs = pl.BlockSpec((tile_b, 2), _row_map)

    flops = 2 * B_pad * (D * 2 * H + 2 * H * H + 2 * H)
    bytes_accessed = (
        int(x.size) * 2
        + sum(int(v.size) * v.dtype.itemsize for v in packed.values())
        + B_pad * 2 * 4
    )

    out = pl.pallas_call(
        _qmodel_kernel,
        out_shape=jax.ShapeDtypeStruct((B_pad, 2), jnp.float32),
        grid_spec=pltpu.PrefetchScalarGridSpec(
            num_scalar_prefetch=0,
            grid=grid,
            in_specs=in_specs,
            out_specs=out_specs,
        ),
        compiler_params=pltpu.CompilerParams(
            dimension_semantics=("parallel",)),
        cost_estimate=pl.CostEstimate(
            flops=flops, transcendentals=0, bytes_accessed=bytes_accessed),
    )(x, packed["w1"], packed["w12"], packed["w22"], packed["slab"])

    q = out[:B]  # NOTE: padded rows carry bias-driven garbage; slice before use
    return q[:, 0:1], q[:, 1:2]


def init_params(key, input_shape, actions_space, hidden=256):
    """nn.Linear-style init: U(-1/sqrt(fan_in), 1/sqrt(fan_in)). Weights [in, out]."""
    def linear(k, fan_in, fan_out):
        kw, kb = jax.random.split(k)
        bound = 1.0 / jnp.sqrt(fan_in)
        w = jax.random.uniform(kw, (fan_in, fan_out), jnp.float32, -bound, bound)
        b = jax.random.uniform(kb, (1, fan_out), jnp.float32, -bound, bound)
        return w, b

    d_in = input_shape + actions_space
    keys = jax.random.split(key, 6)
    w11, b11 = linear(keys[0], d_in, hidden)
    w12, b12 = linear(keys[1], hidden, hidden)
    w13, b13 = linear(keys[2], hidden, 1)
    w21, b21 = linear(keys[3], d_in, hidden)
    w22, b22 = linear(keys[4], hidden, hidden)
    w23, b23 = linear(keys[5], hidden, 1)
    return dict(w11=w11, b11=b11, w12=w12, b12=b12, w13=w13, b13=b13,
                w21=w21, b21=b21, w22=w22, b22=b22, w23=w23, b23=b23)


def pack_params(params):
    """Repack f32 per-layer params into the fused kernel layout (done once).

    slab (f32 [8, 2H]):
      row 0: [b11 | b21]
      row 1: [b12 | b22]
      row 2: [w13 | w23]   (head weight rows)
      row 3: [b13, b23, 0, ...]
    """
    H = params["w12"].shape[0]
    w1 = jnp.concatenate([params["w11"], params["w21"]], axis=1)   # [S+A, 2H]

    slab = jnp.zeros((8, 2 * H), jnp.float32)
    slab = slab.at[0, :].set(
        jnp.concatenate([params["b11"], params["b21"]], axis=1)[0])
    slab = slab.at[1, :].set(
        jnp.concatenate([params["b12"], params["b22"]], axis=1)[0])
    slab = slab.at[2, :H].set(params["w13"][:, 0])
    slab = slab.at[2, H:].set(params["w23"][:, 0])
    slab = slab.at[3, 0].set(params["b13"][0, 0])
    slab = slab.at[3, 1].set(params["b23"][0, 0])

    return dict(
        w1=w1.astype(jnp.bfloat16),
        w12=params["w12"].astype(jnp.bfloat16),
        w22=params["w22"].astype(jnp.bfloat16),
        slab=slab,
    )


def qmodel_reference(state, action, params):
    """Plain-JAX f32 reference of the PyTorch forward."""
    x = jnp.concatenate([state, action], axis=1)
    h1 = jax.nn.relu(x @ params["w11"] + params["b11"])
    h1 = jax.nn.relu(h1 @ params["w12"] + params["b12"])
    q1 = h1 @ params["w13"] + params["b13"]
    h2 = jax.nn.relu(x @ params["w21"] + params["b21"])
    h2 = jax.nn.relu(h2 @ params["w22"] + params["b22"])
    q2 = h2 @ params["w23"] + params["b23"]
    return q1, q2


if __name__ == "__main__":
    # Small SAC-like shapes: batch=2, state dim=8, action dim=4, hidden=256.
    B, S, A = 2, 8, 4
    key = jax.random.PRNGKey(0)
    k_params, k_state, k_action = jax.random.split(key, 3)

    params = init_params(k_params, input_shape=S, actions_space=A)
    packed = pack_params(params)
    state = jax.random.normal(k_state, (B, S), jnp.float32)
    action = jax.random.normal(k_action, (B, A), jnp.float32)

    q1, q2 = qmodel_forward(state, action, packed)
    jax.block_until_ready((q1, q2))

    q1_ref, q2_ref = qmodel_reference(state, action, params)
    assert q1.shape == (B, 1) and q2.shape == (B, 1)
    # bf16 MXU inputs loosen tolerance vs. the pure-f32 reference.
    assert jnp.allclose(q1, q1_ref, atol=5e-2, rtol=5e-2)
    assert jnp.allclose(q2, q2_ref, atol=5e-2, rtol=5e-2)

    print("KERNEL_OK")
</pallas_src>

<mosaic_0001>
module attributes {stable_mosaic.version = 11 : i64} {
  func.func @_qmodel_kernel(%arg0: i32, %arg1: memref<8x12xbf16, #tpu.memory_space<vmem>>, %arg2: memref<12x512xbf16, #tpu.memory_space<vmem>>, %arg3: memref<256x256xbf16, #tpu.memory_space<vmem>>, %arg4: memref<256x256xbf16, #tpu.memory_space<vmem>>, %arg5: memref<8x512xf32, #tpu.memory_space<vmem>>, %arg6: memref<8x2xf32, #tpu.memory_space<vmem>>) attributes {dimension_semantics = [#tpu.dimension_semantics<parallel>], iteration_bounds = array<i64: 1>, scalar_prefetch = 0 : i64, scratch_operands = 0 : i64, tpu.core_type = #tpu.core_type<tc>, window_params = [{transform_indices = @transform_0, window_bounds = array<i64: 8, 12>}, {pipeline_mode = #tpu.pipeline_mode<synchronous>, transform_indices = @transform_1, window_bounds = array<i64: 12, 512>}, {pipeline_mode = #tpu.pipeline_mode<synchronous>, transform_indices = @transform_2, window_bounds = array<i64: 256, 256>}, {pipeline_mode = #tpu.pipeline_mode<synchronous>, transform_indices = @transform_3, window_bounds = array<i64: 256, 256>}, {pipeline_mode = #tpu.pipeline_mode<synchronous>, transform_indices = @transform_4, window_bounds = array<i64: 8, 512>}, {transform_indices = @transform_5, window_bounds = array<i64: 8, 2>}]} {
    %c0 = arith.constant 0 : index
    %c0_0 = arith.constant 0 : index
    %0 = vector.load %arg5[%c0, %c0_0] : memref<8x512xf32, #tpu.memory_space<vmem>>, vector<8x512xf32>
    %c0_1 = arith.constant 0 : index
    %c0_2 = arith.constant 0 : index
    %1 = vector.load %arg1[%c0_1, %c0_2] : memref<8x12xbf16, #tpu.memory_space<vmem>>, vector<8x12xbf16>
    %c0_3 = arith.constant 0 : index
    %c0_4 = arith.constant 0 : index
    %2 = vector.load %arg2[%c0_3, %c0_4] : memref<12x512xbf16, #tpu.memory_space<vmem>>, vector<12x512xbf16>
    %cst = arith.constant dense<0.000000e+00> : vector<8x512xf32>
    %3 = tpu.matmul %1, %2, %cst {dimension_numbers = #tpu.dot_dimension_numbers<[1], [0], [0], [1], [0, 0, 1, 1], [], []>} : vector<8x12xbf16>, vector<12x512xbf16>, vector<8x512xf32> -> vector<8x512xf32>
    %4 = vector.extract_strided_slice %0 {offsets = [0, 0], sizes = [1, 512], strides = [1, 1]} : vector<8x512xf32> to vector<1x512xf32>
    %5 = vector.broadcast %4 : vector<1x512xf32> to vector<8x512xf32>
    %6 = arith.addf %3, %5 : vector<8x512xf32>
    %cst_5 = arith.constant 0.000000e+00 : f32
    %7 = vector.broadcast %cst_5 : f32 to vector<8x512xf32>
    %8 = arith.maximumf %6, %7 : vector<8x512xf32>
    %9 = arith.truncf %8 : vector<8x512xf32> to vector<8x512xbf16>
    %10 = vector.extract_strided_slice %9 {offsets = [0, 0], sizes = [8, 256], strides = [1, 1]} : vector<8x512xbf16> to vector<8x256xbf16>
    %11 = vector.extract_strided_slice %9 {offsets = [0, 256], sizes = [8, 256], strides = [1, 1]} : vector<8x512xbf16> to vector<8x256xbf16>
    %c0_6 = arith.constant 0 : index
    %c0_7 = arith.constant 0 : index
    %12 = vector.load %arg3[%c0_6, %c0_7] : memref<256x256xbf16, #tpu.memory_space<vmem>>, vector<256x256xbf16>
    %cst_8 = arith.constant dense<0.000000e+00> : vector<8x256xf32>
    %13 = tpu.matmul %10, %12, %cst_8 {dimension_numbers = #tpu.dot_dimension_numbers<[1], [0], [0], [1], [0, 0, 1, 1], [], []>} : vector<8x256xbf16>, vector<256x256xbf16>, vector<8x256xf32> -> vector<8x256xf32>
    %14 = vector.extract_strided_slice %0 {offsets = [1, 0], sizes = [1, 256], strides = [1, 1]} : vector<8x512xf32> to vector<1x256xf32>
    %15 = vector.broadcast %14 : vector<1x256xf32> to vector<8x256xf32>
    %16 = arith.addf %13, %15 : vector<8x256xf32>
    %cst_9 = arith.constant 0.000000e+00 : f32
    %17 = vector.broadcast %cst_9 : f32 to vector<8x256xf32>
    %18 = arith.maximumf %16, %17 : vector<8x256xf32>
    %c0_10 = arith.constant 0 : index
    %c0_11 = arith.constant 0 : index
    %19 = vector.load %arg4[%c0_10, %c0_11] : memref<256x256xbf16, #tpu.memory_space<vmem>>, vector<256x256xbf16>
    %cst_12 = arith.constant dense<0.000000e+00> : vector<8x256xf32>
    %20 = tpu.matmul %11, %19, %cst_12 {dimension_numbers = #tpu.dot_dimension_numbers<[1], [0], [0], [1], [0, 0, 1, 1], [], []>} : vector<8x256xbf16>, vector<256x256xbf16>, vector<8x256xf32> -> vector<8x256xf32>
    %21 = vector.extract_strided_slice %0 {offsets = [1, 256], sizes = [1, 256], strides = [1, 1]} : vector<8x512xf32> to vector<1x256xf32>
    %22 = vector.broadcast %21 : vector<1x256xf32> to vector<8x256xf32>
    %23 = arith.addf %20, %22 : vector<8x256xf32>
    %cst_13 = arith.constant 0.000000e+00 : f32
    %24 = vector.broadcast %cst_13 : f32 to vector<8x256xf32>
    %25 = arith.maximumf %23, %24 : vector<8x256xf32>
    %26 = vector.extract_strided_slice %0 {offsets = [2, 0], sizes = [1, 256], strides = [1, 1]} : vector<8x512xf32> to vector<1x256xf32>
    %27 = vector.broadcast %26 : vector<1x256xf32> to vector<8x256xf32>
    %28 = arith.mulf %18, %27 : vector<8x256xf32>
    %cst_14 = arith.constant dense<0.000000e+00> : vector<8xf32>
    %29 = vector.multi_reduction <add>, %28, %cst_14 [1] : vector<8x256xf32> to vector<8xf32>
    %30 = vector.shape_cast %29 : vector<8xf32> to vector<8x1xf32>
    %31 = vector.extract_strided_slice %0 {offsets = [2, 256], sizes = [1, 256], strides = [1, 1]} : vector<8x512xf32> to vector<1x256xf32>
    %32 = vector.broadcast %31 : vector<1x256xf32> to vector<8x256xf32>
    %33 = arith.mulf %25, %32 : vector<8x256xf32>
    %cst_15 = arith.constant dense<0.000000e+00> : vector<8xf32>
    %34 = vector.multi_reduction <add>, %33, %cst_15 [1] : vector<8x256xf32> to vector<8xf32>
    %35 = vector.shape_cast %34 : vector<8xf32> to vector<8x1xf32>
    %36 = tpu.concatenate %30, %35 in 1 : vector<8x1xf32>, vector<8x1xf32> -> vector<8x2xf32>
    %37 = vector.extract_strided_slice %0 {offsets = [3, 0], sizes = [1, 2], strides = [1, 1]} : vector<8x512xf32> to vector<1x2xf32>
    %38 = vector.broadcast %37 : vector<1x2xf32> to vector<8x2xf32>
    %39 = arith.addf %36, %38 : vector<8x2xf32>
    %c0_16 = arith.constant 0 : index
    %c0_17 = arith.constant 0 : index
    %40 = vector.load %arg6[%c0_16, %c0_17] : memref<8x2xf32, #tpu.memory_space<vmem>>, vector<8x2xf32>
    tpu.vector_store %arg6[%c0_16, %c0_17], %39 {strides = array<i32>} : memref<8x2xf32, #tpu.memory_space<vmem>>, vector<8x2xf32>,
    return
  }
  func.func @transform_0(%arg0: i32) -> (i32, i32) {
    %c0_i32 = arith.constant 0 : i32
    %c0_i32_0 = arith.constant 0 : i32
    return %arg0, %c0_i32 : i32, i32
  }
  func.func @transform_1(%arg0: i32) -> (i32, i32) {
    %c0_i32 = arith.constant 0 : i32
    %c0_i32_0 = arith.constant 0 : i32
    %c0_i32_1 = arith.constant 0 : i32
    return %c0_i32, %c0_i32_0 : i32, i32
  }
  func.func @transform_2(%arg0: i32) -> (i32, i32) {
    %c0_i32 = arith.constant 0 : i32
    %c0_i32_0 = arith.constant 0 : i32
    %c0_i32_1 = arith.constant 0 : i32
    return %c0_i32, %c0_i32_0 : i32, i32
  }
  func.func @transform_3(%arg0: i32) -> (i32, i32) {
    %c0_i32 = arith.constant 0 : i32
    %c0_i32_0 = arith.constant 0 : i32
    %c0_i32_1 = arith.constant 0 : i32
    return %c0_i32, %c0_i32_0 : i32, i32
  }
  func.func @transform_4(%arg0: i32) -> (i32, i32) {
    %c0_i32 = arith.constant 0 : i32
    %c0_i32_0 = arith.constant 0 : i32
    %c0_i32_1 = arith.constant 0 : i32
    return %c0_i32, %c0_i32_0 : i32, i32
  }
  func.func @transform_5(%arg0: i32) -> (i32, i32) {
    %c0_i32 = arith.constant 0 : i32
    %c0_i32_0 = arith.constant 0 : i32
    return %arg0, %c0_i32 : i32, i32
  }
}

</mosaic_0001>

<bundles_post_ra>
// kernel: tpu_custom_call.1
= control target key start
LH: loop header
LB: loop body
LE: loop exit
PB: predicated region body
PF: predicated region fallthrough
CT: control target
= control target key end

     0   :  { %10 = vsyncpa [#allocation3], 0  ;;  %s1301_s0 = inlined_call_operand.hbm [shape: bf16[8,12], index: 0, kind: input, shape index: {}]   ;;  %s1302_s1 = inlined_call_operand.hbm [shape: bf16[12,512], index: 1, kind: input, shape index: {}]   ;;  %s1303_s2 = inlined_call_operand.hbm [shape: bf16[256,256], index: 2, kind: input, shape index: {}]   ;;  %s1304_s3 = inlined_call_operand.hbm [shape: bf16[256,256], index: 3, kind: input, shape index: {}]   ;;  %s1305_s4 = inlined_call_operand.hbm [shape: f32[8,512], index: 4, kind: input, shape index: {}]   ;;  %s1306_s5 = inlined_call_operand.vmem [shape: f32[8,2], index: 5, kind: output, shape index: {}]  }
   0x1   :  { %11 = vsyncpa [#allocation5], 0  ;;  %s28_s20 = sshll.u32 %s1302_s1, 4  ;;  %s29_s20 = int_to_ptr.hbm [resolvable:$true] %s28_s20 }
   0x2   :  { %12 = vsyncpa [#allocation8], 0  ;;  %s1215_s21 = smov [#allocation4]   ;;  %s1216_s23 = smov 256  }
   0x3   :  { %s30_s22 = sshll.u32 %s1215_s21, 4  ;;  %s1217_s24 = smov 16   ;;  %s31_s22 = int_to_ptr.vmem [resolvable:$true] %s30_s22 }
   0x4   :  { %36 = dma.hbm_to_vmem [thread:$0]  %s29_s20, 512, %s31_s22, [#allocation5], %s1216_s23, %s1216_s23, %s1217_s24  }
   0x5   :  { %s54_s27 = sshll.u32 %s1304_s3, 4  ;;  %s1218_s28 = smov [#allocation7]   ;;  %s55_s27 = int_to_ptr.hbm [resolvable:$true] %s54_s27 }
   0x6   :  { %s56_s29 = sshll.u32 %s1218_s28, 4  ;;  %s18_s7 = sshll.u32 %s1301_s0, 4  ;;  %s57_s29 = int_to_ptr.vmem [resolvable:$true] %s56_s29  ;;  %s19_s7 = int_to_ptr.hbm [resolvable:$true] %s18_s7 }
   0x7   :  { %s1219_s1 = smov 128   ;;  %s1220_s8 = smov 8  }
   0x8   :  { %62 = dma.hbm_to_vmem [thread:$0]  %s55_s27, 4096, %s57_s29, [#allocation8], %s1219_s1, %s1219_s1, %s1220_s8  }
   0x9   :  { %s41_s11 = sshll.u32 %s1303_s2, 4  ;;  %s1221_s12 = smov [#allocation2]   ;;  %s42_s11 = int_to_ptr.hbm [resolvable:$true] %s41_s11 }
   0xa   :  { %s20_s13 = sshll.u32 %s1221_s12, 4  ;;  %s1222_s3 = smov [#allocation6]   ;;  %s21_s13 = int_to_ptr.vmem [resolvable:$true] %s20_s13 }
   0xb   :  { %23 = dma.hbm_to_vmem [thread:$0]  %s19_s7, 64, %s21_s13, [#allocation3]  }
   0xc   :  { %s43_s14 = sshll.u32 %s1222_s3, 4  ;;  %s68_s0 = sshll.u32 %s1305_s4, 4  ;;  %s44_s14 = int_to_ptr.vmem [resolvable:$true] %s43_s14  ;;  %s69_s0 = int_to_ptr.hbm [resolvable:$true] %s68_s0 }
   0xd   :  { %49 = dma.hbm_to_vmem [thread:$0]  %s42_s11, 4096, %s44_s14, [#allocation5], %s1219_s1, %s1219_s1, %s1220_s8  }
   0xe   :  { %s1223_s17 = smov [#allocation9]  }
   0xf   :  { %s70_s18 = sshll.u32 %s1223_s17, 4  ;;  %s71_s18 = int_to_ptr.vmem [resolvable:$true] %s70_s18 }
  0x10   :  { %73 = dma.hbm_to_vmem [thread:$0]  %s69_s0, 512, %s71_s18, [#allocation8]  }
  0x11   :  { %1209 = dma.done.wait [#allocation3], 64  }
  0x12   :  { %1210 = vsyncadd [#allocation3], 4294967232 }
  0x13   :  { %1211 = dma.done.wait [#allocation5], 4608  }
  0x14   :  { %1212 = vsyncadd [#allocation5], 4294962688 }
  0x15   :  { %1213 = dma.done.wait [#allocation8], 4608  }
  0x16   :  { %1214 = vsyncadd [#allocation8], 4294962688  ;;  %vm128_vm0 = vcmask 1045504   ;;  %v738_v0 = vld [vmem:[#allocation4] sm:$0xf]  ;;  %vm124_vm1 = vcmask 97280  }
  0x17   :  { %v1014_v1 = vld [vmem:[#allocation4 + $0xc] sm:$0x30]  ;;  %v1012_v2 = vld [vmem:[#allocation4 + $0x4] sm:$0xf]  ;;  %v740_v4 = vld [vmem:[#allocation4 + $0x10] sm:$0x30] }
  0x18   :  { %v739_v3 = vor.u32 %v1014_v1, %v738_v0  ;;  %v746_v5 = vld [vmem:[#allocation4 + $0x8] sm:$0xf]  ;;  %v1015_v6 = vld [vmem:[#allocation4 + $0x14] sm:$0x30]  ;;  %v743_v7 = vor.u32 %v1012_v2, %v740_v4  ;;  %v1013_v9 = vld [vmem:[#allocation4 + $0xc] sm:$0xf] }
  0x19   :  { %v747_v8 = vor.u32 %v1015_v6, %v746_v5  ;;  %v748_v10 = vld [vmem:[#allocation4 + $0x18] sm:$0x30]  ;;  %v814_v14 = vld [vmem:[#allocation6 + $0x70] sm:$0xf]  ;;  %v1031_v15 = vld [vmem:[#allocation6 + $0x74] sm:$0xf0] }
  0x1a   :  { %v99_v11 = vld [vmem:[#allocation2] sm:$0xf]  ;;  %v130_v12 = vsel %vm128_vm0, %v739_v3, 0  ;;  %v751_v13 = vor.u32 %v1013_v9, %v748_v10  ;;  %v133_v16 = vsel %vm128_vm0, %v743_v7, 0  ;;  %v815_v18 = vor.u32 %v1031_v15, %v814_v14  ;;  %v878_v19 = vld [vmem:[#allocation6 + $0xf0] sm:$0xf] }
  0x1b   :  { %148 = vmatpush.bf16.msra.mxu0 %v130_v12  ;;  %v136_v17 = vsel %vm128_vm0, %v747_v8, 0  ;;  %v1047_v20 = vld [vmem:[#allocation6 + $0xf4] sm:$0xf0]  ;;  %161 = vmatpush.bf16.msra.mxu1 %v133_v16  ;;  %v1030_v23 = vld [vmem:[#allocation6 + $0x74] sm:$0xf]  ;;  %vm723_vm2 = vcmask 7168  }
  0x1c   :  { %174 = vmatpush.bf16.msra.mxu2 %v136_v17  ;;  %v139_v21 = vsel %vm128_vm0, %v751_v13, 0  ;;  %v879_v22 = vor.u32 %v1047_v20, %v878_v19  ;;  %v816_v24 = vld [vmem:[#allocation6 + $0x78] sm:$0xf0]  ;;  %v1046_v26 = vld [vmem:[#allocation6 + $0xf4] sm:$0xf]  ;;  %vm727_vm3 = vcmask 15360  }
  0x1d   :  { %187 = vmatpush.bf16.msra.mxu3 %v139_v21  ;;  %v819_v25 = vor.u32 %v1030_v23, %v816_v24  ;;  %v880_v27 = vld [vmem:[#allocation6 + $0xf8] sm:$0xf0]  ;;  %v806_v28 = vld [vmem:[#allocation6 + $0x60] sm:$0xf]  ;;  %v1029_v30 = vld [vmem:[#allocation6 + $0x64] sm:$0xf0] }
  0x1e   :  { %752 = vmatmul.msk.bf16.vlgmr.msra.gmra.mxu0 %vm124_vm1, %v99_v11  ;;  %v883_v29 = vor.u32 %v1046_v26, %v880_v27  ;;  %v870_v31 = vld [vmem:[#allocation6 + $0xe0] sm:$0xf]  ;;  %v1045_v32 = vld [vmem:[#allocation6 + $0xe4] sm:$0xf0]  ;;  %753 = vmatmul.msk.bf16.vlgmr.msra.gmra.mxu1 %vm124_vm1, %v99_v11  ;;  %v807_v33 = vor.u32 %v1029_v30, %v806_v28  ;;  %v1028_v35 = vld [vmem:[#allocation6 + $0x64] sm:$0xf] }
  0x1f   :  { %400 = vmatpush.bf16.msrb.mxu0 %v815_v18  ;;  %413 = vmatpush.bf16.msrb.mxu1 %v879_v22  ;;  %v871_v34 = vor.u32 %v1045_v32, %v870_v31  ;;  %v808_v36 = vld [vmem:[#allocation6 + $0x68] sm:$0xf0]  ;;  %v1044_v37 = vld [vmem:[#allocation6 + $0xe4] sm:$0xf]  ;;  %v798_v40 = vld [vmem:[#allocation6 + $0x50] sm:$0xf] }
  0x20   :  { %754 = vmatmul.msk.bf16.vlgmr.msra.gmra.mxu2 %vm124_vm1, %v99_v11  ;;  %755 = vmatmul.msk.bf16.vlgmr.msra.gmra.mxu3 %vm124_vm1, %v99_v11  ;;  %v811_v38 = vor.u32 %v1028_v35, %v808_v36  ;;  %v872_v39 = vld [vmem:[#allocation6 + $0xe8] sm:$0xf0]  ;;  %v1027_v41 = vld [vmem:[#allocation6 + $0x54] sm:$0xf0]  ;;  %v862_v44 = vld [vmem:[#allocation6 + $0xd0] sm:$0xf] }
  0x21   :  { %426 = vmatpush.bf16.msrb.mxu2 %v819_v25  ;;  %439 = vmatpush.bf16.msrb.mxu3 %v883_v29  ;;  %v875_v42 = vor.u32 %v1044_v37, %v872_v39  ;;  %v799_v43 = vor.u32 %v1027_v41, %v798_v40  ;;  %v1043_v45 = vld [vmem:[#allocation6 + $0xd4] sm:$0xf0]  ;;  %v1026_v46 = vld [vmem:[#allocation6 + $0x54] sm:$0xf]  ;;  %v800_v48 = vld [vmem:[#allocation6 + $0x58] sm:$0xf0] }
  0x22   :  { %v863_v47 = vor.u32 %v1043_v45, %v862_v44  ;;  %v1042_v49 = vld [vmem:[#allocation6 + $0xd4] sm:$0xf]  ;;  %v864_v50 = vld [vmem:[#allocation6 + $0xd8] sm:$0xf0]  ;;  %v790_v51 = vld [vmem:[#allocation6 + $0x40] sm:$0xf]  ;;  %v803_v54 = vor.u32 %v1026_v46, %v800_v48 }
  0x23   :  { %401 = vmatpush.bf16.msrb.mxu0 %v807_v33  ;;  %414 = vmatpush.bf16.msrb.mxu1 %v871_v34  ;;  %v1025_v52 = vld [vmem:[#allocation6 + $0x44] sm:$0xf0]  ;;  %v854_v53 = vld [vmem:[#allocation6 + $0xc0] sm:$0xf]  ;;  %v867_v56 = vor.u32 %v1042_v49, %v864_v50  ;;  %v1024_v58 = vld [vmem:[#allocation6 + $0x44] sm:$0xf] }
  0x24   :  { %v1041_v55 = vld [vmem:[#allocation6 + $0xc4] sm:$0xf0]  ;;  %v791_v57 = vor.u32 %v1025_v52, %v790_v51  ;;  %v792_v59 = vld [vmem:[#allocation6 + $0x48] sm:$0xf0]  ;;  %v1040_v60 = vld [vmem:[#allocation6 + $0xc4] sm:$0xf] }
  0x25   :  { %427 = vmatpush.bf16.msrb.mxu2 %v811_v38  ;;  %440 = vmatpush.bf16.msrb.mxu3 %v875_v42  ;;  %v855_v61 = vor.u32 %v1041_v55, %v854_v53  ;;  %v856_v62 = vld [vmem:[#allocation6 + $0xc8] sm:$0xf0]  ;;  %v782_v63 = vld [vmem:[#allocation6 + $0x30] sm:$0xf]  ;;  %v1023_v0 = vld [vmem:[#allocation6 + $0x34] sm:$0xf0]  ;;  %v795_v3 = vor.u32 %v1024_v58, %v792_v59 }
  0x26   :  { %v846_v1 = vld [vmem:[#allocation6 + $0xb0] sm:$0xf]  ;;  %v1039_v2 = vld [vmem:[#allocation6 + $0xb4] sm:$0xf0]  ;;  %v859_v4 = vor.u32 %v1040_v60, %v856_v62  ;;  %v783_v5 = vor.u32 %v1023_v0, %v782_v63  ;;  %v1022_v6 = vld [vmem:[#allocation6 + $0x34] sm:$0xf] }
  0x27   :  { %402 = vmatpush.bf16.msrb.mxu0 %v799_v43  ;;  %415 = vmatpush.bf16.msrb.mxu1 %v863_v47  ;;  %v784_v7 = vld [vmem:[#allocation6 + $0x38] sm:$0xf0]  ;;  %v1038_v8 = vld [vmem:[#allocation6 + $0xb4] sm:$0xf]  ;;  %v847_v9 = vor.u32 %v1039_v2, %v846_v1  ;;  %v774_v11 = vld [vmem:[#allocation6 + $0x20] sm:$0xf] }
  0x28   :  { %v848_v10 = vld [vmem:[#allocation6 + $0xb8] sm:$0xf0]  ;;  %v1021_v12 = vld [vmem:[#allocation6 + $0x24] sm:$0xf0]  ;;  %v838_v13 = vld [vmem:[#allocation6 + $0xa0] sm:$0xf]  ;;  %v787_v15 = vor.u32 %v1022_v6, %v784_v7 }
  0x29   :  { %428 = vmatpush.bf16.msrb.mxu2 %v803_v54  ;;  %441 = vmatpush.bf16.msrb.mxu3 %v867_v56  ;;  %v1037_v14 = vld [vmem:[#allocation6 + $0xa4] sm:$0xf0]  ;;  %v851_v16 = vor.u32 %v1038_v8, %v848_v10  ;;  %v775_v17 = vor.u32 %v1021_v12, %v774_v11  ;;  %v1020_v18 = vld [vmem:[#allocation6 + $0x24] sm:$0xf]  ;;  %v776_v19 = vld [vmem:[#allocation6 + $0x28] sm:$0xf0] }
  0x2a   :  { %v1036_v20 = vld [vmem:[#allocation6 + $0xa4] sm:$0xf]  ;;  %v839_v21 = vor.u32 %v1037_v14, %v838_v13  ;;  %v840_v22 = vld [vmem:[#allocation6 + $0xa8] sm:$0xf0]  ;;  %v766_v23 = vld [vmem:[#allocation6 + $0x10] sm:$0xf]  ;;  %v779_v27 = vor.u32 %v1020_v18, %v776_v19 }
  0x2b   :  { %403 = vmatpush.bf16.msrb.mxu0 %v791_v57  ;;  %416 = vmatpush.bf16.msrb.mxu1 %v855_v61  ;;  %v1019_v24 = vld [vmem:[#allocation6 + $0x14] sm:$0xf0]  ;;  %v830_v25 = vld [vmem:[#allocation6 + $0x90] sm:$0xf]  ;;  %v1018_v28 = vld [vmem:[#allocation6 + $0x14] sm:$0xf]  ;;  %v843_v29 = vor.u32 %v1036_v20, %v840_v22 }
  0x2c   :  { %v1035_v26 = vld [vmem:[#allocation6 + $0x94] sm:$0xf0]  ;;  %v767_v30 = vor.u32 %v1019_v24, %v766_v23  ;;  %v768_v31 = vld [vmem:[#allocation6 + $0x18] sm:$0xf0]  ;;  %v1034_v32 = vld [vmem:[#allocation6 + $0x94] sm:$0xf] }
  0x2d   :  { %429 = vmatpush.bf16.msrb.mxu2 %v795_v3  ;;  %442 = vmatpush.bf16.msrb.mxu3 %v859_v4  ;;  %v832_v33 = vld [vmem:[#allocation6 + $0x98] sm:$0xf0]  ;;  %v831_v34 = vor.u32 %v1035_v26, %v830_v25  ;;  %v758_v35 = vld [vmem:[#allocation6] sm:$0xf]  ;;  %v1017_v36 = vld [vmem:[#allocation6 + $0x4] sm:$0xf0]  ;;  %v771_v41 = vor.u32 %v1018_v28, %v768_v31 }
  0x2e   :  { %v822_v37 = vld [vmem:[#allocation6 + $0x80] sm:$0xf]  ;;  %v1033_v38 = vld [vmem:[#allocation6 + $0x84] sm:$0xf0]  ;;  %v942_v39 = vld [vmem:[#allocation7 + $0x70] sm:$0xf]  ;;  %v835_v44 = vor.u32 %v1034_v32, %v832_v33  ;;  %v759_v45 = vor.u32 %v1017_v36, %v758_v35 }
  0x2f   :  { %404 = vmatpush.bf16.msrb.mxu0 %v783_v5  ;;  %417 = vmatpush.bf16.msrb.mxu1 %v847_v9  ;;  %v1063_v40 = vld [vmem:[#allocation7 + $0x74] sm:$0xf0]  ;;  %v1006_v42 = vld [vmem:[#allocation7 + $0xf0] sm:$0xf]  ;;  %v1016_v46 = vld [vmem:[#allocation6 + $0x4] sm:$0xf]  ;;  %v823_v49 = vor.u32 %v1033_v38, %v822_v37 }
  0x30   :  { %v1079_v43 = vld [vmem:[#allocation7 + $0xf4] sm:$0xf0]  ;;  %v760_v47 = vld [vmem:[#allocation6 + $0x8] sm:$0xf0]  ;;  %v1032_v48 = vld [vmem:[#allocation6 + $0x84] sm:$0xf]  ;;  %v943_v51 = vor.u32 %v1063_v40, %v942_v39 }
  0x31   :  { %430 = vmatpush.bf16.msrb.mxu2 %v787_v15  ;;  %443 = vmatpush.bf16.msrb.mxu3 %v851_v16  ;;  %v824_v50 = vld [vmem:[#allocation6 + $0x88] sm:$0xf0]  ;;  %v1062_v52 = vld [vmem:[#allocation7 + $0x74] sm:$0xf]  ;;  %v944_v53 = vld [vmem:[#allocation7 + $0x78] sm:$0xf0]  ;;  %v1007_v54 = vor.u32 %v1079_v43, %v1006_v42  ;;  %v763_v57 = vor.u32 %v1016_v46, %v760_v47 }
  0x32   :  { %v1078_v55 = vld [vmem:[#allocation7 + $0xf4] sm:$0xf]  ;;  %v1008_v56 = vld [vmem:[#allocation7 + $0xf8] sm:$0xf0]  ;;  %v827_v58 = vor.u32 %v1032_v48, %v824_v50  ;;  %v947_v59 = vor.u32 %v1062_v52, %v944_v53  ;;  %v934_v61 = vld [vmem:[#allocation7 + $0x60] sm:$0xf] }
  0x33   :  { %405 = vmatpush.bf16.msrb.mxu0 %v775_v17  ;;  %418 = vmatpush.bf16.msrb.mxu1 %v839_v21  ;;  %v1011_v60 = vor.u32 %v1078_v55, %v1008_v56  ;;  %v1061_v62 = vld [vmem:[#allocation7 + $0x64] sm:$0xf0]  ;;  %v998_v63 = vld [vmem:[#allocation7 + $0xe0] sm:$0xf]  ;;  %v1060_v2 = vld [vmem:[#allocation7 + $0x64] sm:$0xf] }
  0x34   :  { %v935_v0 = vor.u32 %v1061_v62, %v934_v61  ;;  %v1077_v1 = vld [vmem:[#allocation7 + $0xe4] sm:$0xf0]  ;;  %v936_v4 = vld [vmem:[#allocation7 + $0x68] sm:$0xf0]  ;;  %v1076_v5 = vld [vmem:[#allocation7 + $0xe4] sm:$0xf] }
  0x35   :  { %431 = vmatpush.bf16.msrb.mxu2 %v779_v27  ;;  %444 = vmatpush.bf16.msrb.mxu3 %v843_v29  ;;  %v999_v3 = vor.u32 %v1077_v1, %v998_v63  ;;  %v939_v6 = vor.u32 %v1060_v2, %v936_v4  ;;  %v1000_v7 = vld [vmem:[#allocation7 + $0xe8] sm:$0xf0]  ;;  %v926_v9 = vld [vmem:[#allocation7 + $0x50] sm:$0xf]  ;;  %v1059_v10 = vld [vmem:[#allocation7 + $0x54] sm:$0xf0] }
  0x36   :  { %v1003_v8 = vor.u32 %v1076_v5, %v1000_v7  ;;  %v990_v11 = vld [vmem:[#allocation7 + $0xd0] sm:$0xf]  ;;  %v927_v12 = vor.u32 %v1059_v10, %v926_v9  ;;  %v1075_v13 = vld [vmem:[#allocation7 + $0xd4] sm:$0xf0]  ;;  %v1058_v14 = vld [vmem:[#allocation7 + $0x54] sm:$0xf] }
  0x37   :  { %406 = vmatpush.bf16.msrb.mxu0 %v767_v30  ;;  %419 = vmatpush.bf16.msrb.mxu1 %v831_v34  ;;  %v928_v15 = vld [vmem:[#allocation7 + $0x58] sm:$0xf0]  ;;  %v991_v16 = vor.u32 %v1075_v13, %v990_v11  ;;  %v1074_v18 = vld [vmem:[#allocation7 + $0xd4] sm:$0xf]  ;;  %v918_v21 = vld [vmem:[#allocation7 + $0x40] sm:$0xf] }
  0x38   :  { %v931_v17 = vor.u32 %v1058_v14, %v928_v15  ;;  %v992_v19 = vld [vmem:[#allocation7 + $0xd8] sm:$0xf0]  ;;  %v1057_v22 = vld [vmem:[#allocation7 + $0x44] sm:$0xf0]  ;;  %v982_v23 = vld [vmem:[#allocation7 + $0xc0] sm:$0xf] }
  0x39   :  { %432 = vmatpush.bf16.msrb.mxu2 %v771_v41  ;;  %445 = vmatpush.bf16.msrb.mxu3 %v835_v44  ;;  %v995_v20 = vor.u32 %v1074_v18, %v992_v19  ;;  %v919_v24 = vor.u32 %v1057_v22, %v918_v21  ;;  %v1073_v25 = vld [vmem:[#allocation7 + $0xc4] sm:$0xf0]  ;;  %v1056_v26 = vld [vmem:[#allocation7 + $0x44] sm:$0xf]  ;;  %v920_v27 = vld [vmem:[#allocation7 + $0x48] sm:$0xf0] }
  0x3a   :  { %v983_v28 = vor.u32 %v1073_v25, %v982_v23  ;;  %v923_v29 = vor.u32 %v1056_v26, %v920_v27  ;;  %v1072_v30 = vld [vmem:[#allocation7 + $0xc4] sm:$0xf]  ;;  %v984_v31 = vld [vmem:[#allocation7 + $0xc8] sm:$0xf0]  ;;  %v910_v33 = vld [vmem:[#allocation7 + $0x30] sm:$0xf] }
  0x3b   :  { %407 = vmatpush.bf16.msrb.mxu0 %v759_v45  ;;  %420 = vmatpush.bf16.msrb.mxu1 %v823_v49  ;;  %v987_v32 = vor.u32 %v1072_v30, %v984_v31  ;;  %v1055_v34 = vld [vmem:[#allocation7 + $0x34] sm:$0xf0]  ;;  %v974_v36 = vld [vmem:[#allocation7 + $0xb0] sm:$0xf]  ;;  %v1054_v38 = vld [vmem:[#allocation7 + $0x34] sm:$0xf] }
  0x3c   :  { %v911_v35 = vor.u32 %v1055_v34, %v910_v33  ;;  %v1071_v37 = vld [vmem:[#allocation7 + $0xb4] sm:$0xf0]  ;;  %v912_v40 = vld [vmem:[#allocation7 + $0x38] sm:$0xf0]  ;;  %v1070_v41 = vld [vmem:[#allocation7 + $0xb4] sm:$0xf] }
  0x3d   :  { %433 = vmatpush.bf16.msrb.mxu2 %v763_v57  ;;  %446 = vmatpush.bf16.msrb.mxu3 %v827_v58  ;;  %v975_v39 = vor.u32 %v1071_v37, %v974_v36  ;;  %v976_v42 = vld [vmem:[#allocation7 + $0xb8] sm:$0xf0]  ;;  %v915_v43 = vor.u32 %v1054_v38, %v912_v40  ;;  %v902_v45 = vld [vmem:[#allocation7 + $0x20] sm:$0xf]  ;;  %v1053_v46 = vld [vmem:[#allocation7 + $0x24] sm:$0xf0] }
  0x3e   :  { %v979_v44 = vor.u32 %v1070_v41, %v976_v42  ;;  %v966_v47 = vld [vmem:[#allocation7 + $0xa0] sm:$0xf]  ;;  %v903_v48 = vor.u32 %v1053_v46, %v902_v45  ;;  %v1069_v49 = vld [vmem:[#allocation7 + $0xa4] sm:$0xf0]  ;;  %v1052_v50 = vld [vmem:[#allocation7 + $0x24] sm:$0xf] }
  0x3f   :  { %655 = vmatpush.bf16.msra.mxu0 %v943_v51  ;;  %668 = vmatpush.bf16.msra.mxu1 %v1007_v54  ;;  %v904_v51 = vld [vmem:[#allocation7 + $0x28] sm:$0xf0]  ;;  %v967_v52 = vor.u32 %v1069_v49, %v966_v47  ;;  %v1068_v54 = vld [vmem:[#allocation7 + $0xa4] sm:$0xf]  ;;  %v894_v56 = vld [vmem:[#allocation7 + $0x10] sm:$0xf] }
  0x40   :  { %v907_v53 = vor.u32 %v1052_v50, %v904_v51  ;;  %v968_v55 = vld [vmem:[#allocation7 + $0xa8] sm:$0xf0]  ;;  %v1051_v58 = vld [vmem:[#allocation7 + $0x14] sm:$0xf0]  ;;  %v1050_v63 = vld [vmem:[#allocation7 + $0x14] sm:$0xf] }
  0x41   :  { %681 = vmatpush.bf16.msra.mxu2 %v947_v59  ;;  %694 = vmatpush.bf16.msra.mxu3 %v1011_v60  ;;  %v971_v57 = vor.u32 %v1068_v54, %v968_v55  ;;  %v958_v59 = vld [vmem:[#allocation7 + $0x90] sm:$0xf]  ;;  %v1067_v60 = vld [vmem:[#allocation7 + $0x94] sm:$0xf0]  ;;  %v895_v61 = vor.u32 %v1051_v58, %v894_v56  ;;  %v1066_v1 = vld [vmem:[#allocation7 + $0x94] sm:$0xf] }
  0x42   :  { %v959_v62 = vor.u32 %v1067_v60, %v958_v59  ;;  %v886_v4 = vld [vmem:[#allocation7] sm:$0xf]  ;;  %v1049_v5 = vld [vmem:[#allocation7 + $0x4] sm:$0xf0]  ;;  %v1048_v9 = vld [vmem:[#allocation7 + $0x4] sm:$0xf] }
  0x43   :  { %656 = vmatpush.bf16.msra.mxu0 %v935_v0  ;;  %669 = vmatpush.bf16.msra.mxu1 %v999_v3  ;;  %v896_v0 = vld [vmem:[#allocation7 + $0x18] sm:$0xf0]  ;;  %v950_v7 = vld [vmem:[#allocation7 + $0x80] sm:$0xf]  ;;  %v887_v10 = vor.u32 %v1049_v5, %v886_v4  ;;  %v888_v11 = vld [vmem:[#allocation7 + $0x8] sm:$0xf0] }
  0x44   :  { %v899_v2 = vor.u32 %v1050_v63, %v896_v0  ;;  %v960_v3 = vld [vmem:[#allocation7 + $0x98] sm:$0xf0]  ;;  %v952_v13 = vld [vmem:[#allocation7 + $0x88] sm:$0xf0]  ;;  %v891_v15 = vor.u32 %v1048_v9, %v888_v11 }
  0x45   :  { %682 = vmatpush.bf16.msra.mxu2 %v939_v6  ;;  %695 = vmatpush.bf16.msra.mxu3 %v1003_v8  ;;  %v963_v6 = vor.u32 %v1066_v1, %v960_v3  ;;  %v1065_v8 = vld [vmem:[#allocation7 + $0x84] sm:$0xf0]  ;;  %v1285_v26 = vld [vmem:[#allocation9 + $0x18] sm:$0xff] }
  0x46   :  { %v951_v14 = vor.u32 %v1065_v8, %v950_v7  ;;  %v1279_v18 = vld [vmem:[#allocation9 + $0x8] sm:$0xff]  ;;  %v107_v30 = vperm.slane %v1285_v26, 0 }
  0x47   :  { %657 = vmatpush.bf16.msra.mxu0 %v927_v12  ;;  %670 = vmatpush.bf16.msra.mxu1 %v991_v16  ;;  %v1064_v12 = vld [vmem:[#allocation7 + $0x84] sm:$0xf]  ;;  %v232_v55 = vperm.slane %v1279_v18, 1  ;;  %v710_v1 = vperm.slane %v1279_v18, 2 }
  0x48   :  { %v955_v16 = vor.u32 %v1064_v12, %v952_v13  ;;  %v487_v12 = vperm.slane %v1285_v26, 1 }
  0x49   :  { %683 = vmatpush.bf16.msra.mxu2 %v931_v17  ;;  %696 = vmatpush.bf16.msra.mxu3 %v995_v20  ;;  %v1277_v17 = vld [vmem:[#allocation9] sm:$0xff]  ;;  %v105_v20 = vperm.slane %v1279_v18, 0 }
  0x4a   :  { %v104_v19 = vperm.slane %v1277_v17, 0  ;;  %v231_v51 = vperm.slane %v1277_v17, 1  ;;  %v709_v0 = vperm.slane %v1277_v17, 2 }
  0x4b   :  { %658 = vmatpush.bf16.msra.mxu0 %v919_v24  ;;  %671 = vmatpush.bf16.msra.mxu1 %v983_v28  ;;  %v1283_v24 = vld [vmem:[#allocation9 + $0x10] sm:$0xff] }
  0x4c   :  { %v486_v3 = vperm.slane %v1283_v24, 1 }
  0x4d   :  { %684 = vmatpush.bf16.msra.mxu2 %v923_v29  ;;  %697 = vmatpush.bf16.msra.mxu3 %v987_v32  ;;  %v106_v29 = vperm.slane %v1283_v24, 0 }
  0x4f   :  { %659 = vmatpush.bf16.msra.mxu0 %v911_v35  ;;  %672 = vmatpush.bf16.msra.mxu1 %v975_v39 }
  0x51   :  { %685 = vmatpush.bf16.msra.mxu2 %v915_v43  ;;  %698 = vmatpush.bf16.msra.mxu3 %v979_v44 }
  0x53   :  { %660 = vmatpush.bf16.msra.mxu0 %v903_v48  ;;  %673 = vmatpush.bf16.msra.mxu1 %v967_v52 }
  0x55   :  { %686 = vmatpush.bf16.msra.mxu2 %v907_v53  ;;  %699 = vmatpush.bf16.msra.mxu3 %v971_v57 }
  0x57   :  { %661 = vmatpush.bf16.msra.mxu0 %v895_v61  ;;  %674 = vmatpush.bf16.msra.mxu1 %v959_v62 }
  0x59   :  { %687 = vmatpush.bf16.msra.mxu2 %v899_v2  ;;  %700 = vmatpush.bf16.msra.mxu3 %v963_v6 }
  0x5b   :  { %662 = vmatpush.bf16.msra.mxu0 %v887_v10  ;;  %675 = vmatpush.bf16.msra.mxu1 %v951_v14 }
  0x5d   :  { %688 = vmatpush.bf16.msra.mxu2 %v891_v15  ;;  %701 = vmatpush.bf16.msra.mxu3 %v955_v16 }
  0x9b   :  { %v150_v21 = vpop.f32.mrf.mxu0  ;;  %v163_v23 = vpop.f32.mrf.mxu1 }
  0x9c   :  { %v151_v22 = vadd.f32 %v150_v21, %v104_v19  ;;  %v164_v25 = vadd.f32 %v163_v23, %v105_v20  ;;  %v716_v21 = vperm.slane %v1283_v24, 2  ;;  %v717_v23 = vperm.slane %v1285_v26, 2 }
  0x9e   :  { %v193_v27 = vmax.f32 %v151_v22, 0.0  ;;  %v194_v28 = vmax.f32 %v164_v25, 0.0 }
  0xa0   :  { %v197_v31 = vpack.c.bf16 %v194_v28, %v193_v27 }
  0xa2   :  { %v234_v36 = vunpack.c.l.b16 %v197_v31  ;;  %v235_v37 = vunpack.c.h.b16 %v197_v31 }
  0xa3   :  { %v176_v32 = vpop.f32.mrf.mxu2  ;;  %v152_v33 = vpop.f32.mrf.mxu0 }
  0xa4   :  { %v177_v34 = vadd.f32 %v176_v32, %v106_v29  ;;  %v189_v35 = vpop.f32.mrf.mxu3  ;;  %v165_v38 = vpop.f32.mrf.mxu1  ;;  %v236_v40 = vpack.c.b16 %v234_v36, %v234_v36  ;;  %v237_v41 = vpack.c.b16 %v235_v37, %v235_v37  ;;  %v725_v33 = vperm.slane %v1277_v17, 3 }
  0xa5   :  { %v190_v39 = vadd.f32 %v189_v35, %v107_v30 }
  0xa6   :  { %v195_v42 = vmax.f32 %v177_v34, 0.0  ;;  %408 = vmatmul.bf16.vlgmr.msrb.gmra.mxu0 %v236_v40  ;;  %421 = vmatmul.bf16.vlgmr.msrb.gmra.mxu1 %v237_v41 }
  0xa7   :  { %v196_v43 = vmax.f32 %v190_v39, 0.0  ;;  %434 = vmatmul.bf16.vlgmr.msrb.gmra.mxu2 %v236_v40  ;;  %447 = vmatmul.bf16.vlgmr.msrb.gmra.mxu3 %v237_v41 }
  0xa9   :  { %v198_v45 = vpack.c.bf16 %v196_v43, %v195_v42 }
  0xab   :  { %v178_v44 = vpop.f32.mrf.mxu2  ;;  %v489_v47 = vunpack.c.l.b16 %v198_v45  ;;  %v490_v48 = vunpack.c.h.b16 %v198_v45 }
  0xac   :  { %v191_v46 = vpop.f32.mrf.mxu3 }
  0xad   :  { %v491_v49 = vpack.c.b16 %v489_v47, %v489_v47  ;;  %v492_v50 = vpack.c.b16 %v490_v48, %v490_v48 }
  0xb6   :  { %663 = vmatmul.bf16.vlgmr.msra.gmra.mxu0 %v491_v49  ;;  %676 = vmatmul.bf16.vlgmr.msra.gmra.mxu1 %v492_v50 }
  0xb7   :  { %689 = vmatmul.bf16.vlgmr.msra.gmra.mxu2 %v491_v49  ;;  %702 = vmatmul.bf16.vlgmr.msra.gmra.mxu3 %v492_v50 }
 0x123   :  { %v409_v52 = vpop.f32.mrf.mxu0  ;;  %v422_v53 = vpop.f32.mrf.mxu1 }
 0x124   :  { %v410_v54 = vadd.f32 %v409_v52, %v231_v51 }
 0x126   :  { %v423_v56 = vadd.f32 %v422_v53, %v410_v54 }
 0x128   :  { %v452_v62 = vmax.f32 %v423_v56, 0.0 }
 0x12a   :  { %v435_v57 = vpop.f32.mrf.mxu2  ;;  %v448_v58 = vpop.f32.mrf.mxu3  ;;  %v711_v4 = vmul.f32 %v709_v0, %v452_v62 }
 0x12b   :  { %v436_v59 = vadd.f32 %v435_v57, %v232_v55  ;;  %v411_v60 = vpop.f32.mrf.mxu0  ;;  %v424_v61 = vpop.f32.mrf.mxu1 }
 0x12d   :  { %v449_v63 = vadd.f32 %v448_v58, %v436_v59 }
 0x12f   :  { %v453_v2 = vmax.f32 %v449_v63, 0.0 }
 0x131   :  { %v712_v5 = vmul.f32 %v710_v1, %v453_v2 }
 0x132   :  { %v437_v6 = vpop.f32.mrf.mxu2  ;;  %v450_v7 = vpop.f32.mrf.mxu3 }
 0x133   :  { %v664_v8 = vpop.f32.mrf.mxu0  ;;  %v677_v9 = vpop.f32.mrf.mxu1  ;;  %v713_v10 = vadd.f32 %v712_v5, %v711_v4 }
 0x134   :  { %v665_v11 = vadd.f32 %v664_v8, %v486_v3 }
 0x135   :  { %714 = vadd.xlane.f32.xlu0 %v713_v10 }
 0x136   :  { %v678_v13 = vadd.f32 %v677_v9, %v665_v11 }
 0x138   :  { %v707_v20 = vmax.f32 %v678_v13, 0.0 }
 0x13a   :  { %v690_v14 = vpop.f32.mrf.mxu2  ;;  %v703_v15 = vpop.f32.mrf.mxu3  ;;  %v718_v27 = vmul.f32 %v716_v21, %v707_v20 }
 0x13b   :  { %v691_v16 = vadd.f32 %v690_v14, %v487_v12  ;;  %v666_v19 = vpop.f32.mrf.mxu0  ;;  %v679_v18 = vpop.f32.mrf.mxu1 }
 0x13d   :  { %v704_v22 = vadd.f32 %v703_v15, %v691_v16 }
 0x13f   :  { %v708_v25 = vmax.f32 %v704_v22, 0.0 }
 0x141   :  { %v719_v28 = vmul.f32 %v717_v23, %v708_v25 }
 0x142   :  { %v692_v29 = vpop.f32.mrf.mxu2  ;;  %v705_v30 = vpop.f32.mrf.mxu3 }
 0x143   :  { %v720_v31 = vadd.f32 %v719_v28, %v718_v27 }
 0x145   :  { %721 = vadd.xlane.f32.xlu0 %v720_v31 }
 0x1a8   :  { %v715_v32 = vpop.xlane.xlu0 %714 }
 0x1b8   :  { %v722_v34 = vpop.xlane.xlu0 %721 }
 0x1b9   :  { %v724_v35 = vsel %vm723_vm2, %v715_v32, %v722_v34 }
 0x1ba   :  { %v726_v36 = vadd.f32 %v725_v33, %v724_v35 }
 0x1bc   :  { %728 = vst.msk [vmem:[%s1306_s5] sm:$0xff] %vm727_vm3, %v726_v36 }
 0x1bd   :  { %733 = vsyncpa [#allocation3], 1 }
 0x1be   :  { %734 = vsyncpa [#allocation5], 1 }
 0x1bf   :  { %735 = vsyncpa [#allocation8], 1 }

</bundles_post_ra>
